<compile_context>
chip_gen: v5e
topology: v5e:2x2
jax: 0.10.0
libtpu: 0.0.40
codegen_flags: <defaults>
</compile_context>

<pallas_src>
import functools

import jax
import jax.numpy as jnp
from jax import lax
from jax.experimental import pallas as pl
from jax.experimental.pallas import tpu as pltpu

EPS = 1e-5
LANE = 128
VMEM_LIMIT_BYTES = 40 * 1024 * 1024   # leave headroom vs. v7x's 64 MiB physical VMEM
TILE_VMEM_BUDGET = 24 * 1024 * 1024   # per-call tile budget used for row-tile selection
MAX_TM = 512                          # ~512-row tiles hit the measured roofline sweet spot


def _round_up(x, m):
    return (x + m - 1) // m * m


def _cdiv(a, b):
    return -(-a // b)


def _arr_bytes(rows, cols, itemsize):
    """VMEM bytes for a (rows, cols) tile including sublane/lane padding."""
    sub = 16 if itemsize == 2 else 8
    return _round_up(max(rows, 1), sub) * _round_up(max(cols, 1), LANE) * itemsize


def _block_vmem_footprint(tm, K, P, with_head):
    b = 2 * _arr_bytes(tm, K, 2)                       # patches tile (bf16), double-buffered
    b += 2 * _arr_bytes(tm, P, 2)                      # bf16 recast / output tile, double-buffered
    b += 2 * _arr_bytes(tm, P, 4)                      # live f32 matmul accumulators
    # weights + shifts, single-buffered (constant index_map, pl.Buffered(1))
    b += _arr_bytes(K, P, 2) + 2 * _arr_bytes(P, P, 2) + 3 * _arr_bytes(1, P, 4)
    if with_head:
        b += _arr_bytes(P, LANE, 2) + _arr_bytes(1, LANE, 4)   # head weight + shift
        b += _arr_bytes(tm, LANE, 4)                           # head activations (f32)
        b += 2 * _arr_bytes(8, LANE, 4)                        # pooled accumulator + out block
    return b


def _choose_rows(M, K, P, with_head, min_tiles=1):
    """Largest row tile (multiple of 8, <= MAX_TM) that fits the VMEM budget."""
    if M <= 8:
        return M
    cap = min(MAX_TM, _round_up(M, 8))
    if min_tiles > 1:
        # guarantee >= min_tiles grid steps so v7x can split the 'parallel' axis across TCs
        cap = min(cap, max(8, _round_up(_cdiv(M, min_tiles), 8)))
    tm = max(8, cap)
    while tm > 8 and _block_vmem_footprint(tm, K, P, with_head) > TILE_VMEM_BUDGET:
        tm = max(8, _round_up(tm // 2, 8))
    return tm


def _const_spec(shape, index_map):
    """BlockSpec for a constant-index operand; single-buffered if supported."""
    try:
        return pl.BlockSpec(shape, index_map,
                            pipeline_mode=pl.Buffered(buffer_count=1))
    except TypeError:
        return pl.BlockSpec(shape, index_map)


# ---------------------------------------------------------------------------
# Pallas kernels
# ---------------------------------------------------------------------------
def nin_block_kernel(x_ref, w1_ref, t1_ref, w2_ref, t2_ref, w3_ref, t3_ref, o_ref):
    """One full NiN block on a TM-row tile, fully fused in VMEM.

    x: (TM, K) bf16 im2col patches of the 3x3 stride-2 conv
    w1: (K, P) bf16 (BN scale folded in)   t1: (1, P) f32 shift
    w2, w3: (P, P) bf16                    t2, t3: (1, P) f32
    o: (TM, P) bf16
    """
    h = jnp.dot(x_ref[...], w1_ref[...], preferred_element_type=jnp.float32)
    h = jnp.maximum(h + t1_ref[...], 0.0)
    h = jnp.dot(h.astype(jnp.bfloat16), w2_ref[...], preferred_element_type=jnp.float32)
    h = jnp.maximum(h + t2_ref[...], 0.0)
    h = jnp.dot(h.astype(jnp.bfloat16), w3_ref[...], preferred_element_type=jnp.float32)
    h = jnp.maximum(h + t3_ref[...], 0.0)
    o_ref[...] = h.astype(o_ref.dtype)


def nin_block_head_kernel(x_ref, w1_ref, t1_ref, w2_ref, t2_ref, w3_ref, t3_ref,
                          wh_ref, th_ref, o_ref, acc_ref, *, s_valid):
    """Last NiN block fused with the classification head.

    Grid = (sample n [parallel], spatial tile j [reduction]).
    x: (1, TS, K) bf16 patches of sample n; block conv + two 1x1 convs + ReLU (BN folded),
    then 1x1 head conv (padded to 128 out lanes) + ReLU, masked spatial sum into acc (1,128),
    finalize = mean over spatial and logit1 - logit0 written to o (1, 8, 128).
    """
    j = pl.program_id(1)

    @pl.when(j == 0)
    def _():
        acc_ref[...] = jnp.zeros_like(acc_ref)

    x = x_ref[...]
    _, t, k = x.shape
    h = jnp.dot(x.reshape(t, k), w1_ref[...], preferred_element_type=jnp.float32)
    h = jnp.maximum(h + t1_ref[...], 0.0)
    h = jnp.dot(h.astype(jnp.bfloat16), w2_ref[...], preferred_element_type=jnp.float32)
    h = jnp.maximum(h + t2_ref[...], 0.0)
    h = jnp.dot(h.astype(jnp.bfloat16), w3_ref[...], preferred_element_type=jnp.float32)
    h = jnp.maximum(h + t3_ref[...], 0.0)                                   # (TS, P) f32

    y = jnp.dot(h.astype(jnp.bfloat16), wh_ref[...], preferred_element_type=jnp.float32)
    y = jnp.maximum(y + th_ref[...], 0.0)                                   # (TS, 128) f32

    num_valid = s_valid - j * t

    # Hoisted masking: only a ragged last spatial tile pays for the iota/compare/select.
    @pl.when(num_valid >= t)
    def _():
        acc_ref[...] += jnp.sum(y, axis=0, keepdims=True)

    @pl.when(num_valid < t)
    def _():
        row = lax.broadcasted_iota(jnp.int32, (t, 1), 0)
        acc_ref[...] += jnp.sum(jnp.where(row < num_valid, y, 0.0), axis=0, keepdims=True)

    @pl.when(j == pl.num_programs(1) - 1)
    def _():
        m = acc_ref[...] * (1.0 / s_valid)                                  # (1, 128)
        diff = m[:, 1:2] - m[:, 0:1]                                        # (1, 1)
        o_ref[...] = jnp.broadcast_to(diff.reshape(1, 1, 1), o_ref.shape).astype(o_ref.dtype)


# ---------------------------------------------------------------------------
# Wrappers around pallas_call
# ---------------------------------------------------------------------------
def fused_nin_block(patches2d, w1, t1, w2, t2, w3, t3):
    """patches2d: (M, K) bf16 -> (M, P) bf16, whole NiN block in one kernel."""
    M, K = patches2d.shape
    P = w1.shape[1]
    tm = min(_choose_rows(M, K, P, with_head=False, min_tiles=2), M)
    grid = (_cdiv(M, tm),)

    return pl.pallas_call(
        nin_block_kernel,
        out_shape=jax.ShapeDtypeStruct((M, P), jnp.bfloat16),
        grid=grid,
        in_specs=[
            pl.BlockSpec((tm, K), lambda i: (i, 0)),
            _const_spec((K, P), lambda i: (0, 0)),
            _const_spec((1, P), lambda i: (0, 0)),
            _const_spec((P, P), lambda i: (0, 0)),
            _const_spec((1, P), lambda i: (0, 0)),
            _const_spec((P, P), lambda i: (0, 0)),
            _const_spec((1, P), lambda i: (0, 0)),
        ],
        out_specs=pl.BlockSpec((tm, P), lambda i: (i, 0)),
        compiler_params=pltpu.CompilerParams(
            dimension_semantics=("parallel",),               # independent M tiles -> both TCs
            vmem_limit_bytes=VMEM_LIMIT_BYTES,
            allow_input_fusion=[True] + [False] * 6),        # let XLA fuse the im2col producer
    )(patches2d, w1, t1, w2, t2, w3, t3)


def fused_nin_block_head(patches3d, w1, t1, w2, t2, w3, t3, wh, th):
    """Last block + head: (N, S, K) bf16 patches -> (N,) f32 logit1 - logit0."""
    N, S, K = patches3d.shape
    P = w1.shape[1]
    ts = min(_choose_rows(S, K, P, with_head=True, min_tiles=1), S)
    grid = (N, _cdiv(S, ts))

    kernel = functools.partial(nin_block_head_kernel, s_valid=S)
    out = pl.pallas_call(
        kernel,
        out_shape=jax.ShapeDtypeStruct((N, 8, LANE), jnp.float32),
        grid=grid,
        in_specs=[
            pl.BlockSpec((1, ts, K), lambda n, j: (n, j, 0)),
            _const_spec((K, P), lambda n, j: (0, 0)),
            _const_spec((1, P), lambda n, j: (0, 0)),
            _const_spec((P, P), lambda n, j: (0, 0)),
            _const_spec((1, P), lambda n, j: (0, 0)),
            _const_spec((P, P), lambda n, j: (0, 0)),
            _const_spec((1, P), lambda n, j: (0, 0)),
            _const_spec((P, LANE), lambda n, j: (0, 0)),
            _const_spec((1, LANE), lambda n, j: (0, 0)),
        ],
        out_specs=pl.BlockSpec((1, 8, LANE), lambda n, j: (n, 0, 0)),
        scratch_shapes=[pltpu.VMEM((1, LANE), jnp.float32)],
        compiler_params=pltpu.CompilerParams(
            dimension_semantics=("parallel", "arbitrary"),   # spatial axis is a reduction
            vmem_limit_bytes=VMEM_LIMIT_BYTES,
            allow_input_fusion=[True] + [False] * 8),
    )(patches3d, w1, t1, w2, t2, w3, t3, wh, th)
    return out[:, 0, 0]


# ---------------------------------------------------------------------------
# Glue: im2col for the 3x3 stride-2 pad-1 conv (plain JAX, layout plumbing only;
# exposed to XLA input fusion via allow_input_fusion on the pallas_call operand)
# ---------------------------------------------------------------------------
def im2col_3x3_s2_p1(x):  # x: (N, H, W, C) NHWC
    N, H, W, C = x.shape
    Ho = (H + 2 - 3) // 2 + 1
    Wo = (W + 2 - 3) // 2 + 1
    xp = jnp.pad(x, ((0, 0), (1, 1), (1, 1), (0, 0)))
    cols = []
    for dh in range(3):
        for dw in range(3):
            cols.append(xp[:, dh:dh + 2 * (Ho - 1) + 1:2,
                           dw:dw + 2 * (Wo - 1) + 1:2, :])
    # K-axis ordering: (kh, kw, cin) -- must match the weight reshape below.
    patches = jnp.concatenate(cols, axis=-1)  # (N, Ho, Wo, 9*C)
    return patches, Ho, Wo


# ---------------------------------------------------------------------------
# Parameter construction (deterministic, synthetic)
# ---------------------------------------------------------------------------
def _bn_params(key, c):
    k1, k2, k3, k4 = jax.random.split(key, 4)
    gamma = 1.0 + 0.1 * jax.random.normal(k1, (c,), jnp.float32)
    beta = 0.1 * jax.random.normal(k2, (c,), jnp.float32)
    mean = 0.05 * jax.random.normal(k3, (c,), jnp.float32)
    var = 0.5 + jax.random.uniform(k4, (c,), jnp.float32)
    return gamma, beta, mean, var


def _conv_params(key, cout, cin, kh, kw):
    k1, k2 = jax.random.split(key)
    fan_in = cin * kh * kw
    w = jax.random.normal(k1, (cout, cin, kh, kw), jnp.float32) / jnp.sqrt(fan_in)
    b = 0.1 * jax.random.normal(k2, (cout,), jnp.float32)
    return w, b


def fold_bn(conv_bias, gamma, beta, mean, var):
    scale = gamma / jnp.sqrt(var + EPS)
    shift = beta + scale * (conv_bias - mean)
    return scale, shift


def make_params(key, in_channels, depth, width, base_width, num_logits=2):
    planes = base_width * width
    P = _round_up(planes, LANE)      # lane-dense padded channel count

    raw = {"blocks": [], "head": {}}
    keys = jax.random.split(key, depth + 1)
    cin = in_channels
    for d in range(depth):
        bk = jax.random.split(keys[d], 6)
        w1, b1 = _conv_params(bk[0], planes, cin, 3, 3)
        bn1 = _bn_params(bk[1], planes)
        w2, b2 = _conv_params(bk[2], planes, planes, 1, 1)
        bn2 = _bn_params(bk[3], planes)
        w3, b3 = _conv_params(bk[4], planes, planes, 1, 1)
        bn3 = _bn_params(bk[5], planes)
        raw["blocks"].append(dict(w1=w1, b1=b1, bn1=bn1,
                                  w2=w2, b2=b2, bn2=bn2,
                                  w3=w3, b3=b3, bn3=bn3))
        cin = planes
    hk = jax.random.split(keys[-1], 2)
    wh, bh = _conv_params(hk[0], num_logits, planes, 1, 1)
    bnh = _bn_params(hk[1], num_logits)
    raw["head"] = dict(w=wh, b=bh, bn=bnh)

    def pad_mat(w, rpad, cpad):
        r, c = w.shape
        return jnp.zeros((rpad, cpad), w.dtype).at[:r, :c].set(w)

    def pad_vec(v, cpad):
        return jnp.zeros((1, cpad), v.dtype).at[0, :v.shape[0]].set(v)

    # Folded / matmul-layout parameters: BN scale folded into weight columns (bf16),
    # channels zero-padded to multiples of 128 lanes, only the additive shift
    # (f32, shape (1, Cout_pad)) survives into the kernel epilogue.
    folded = {"blocks": [], "head": {}}
    cin, cin_pad = in_channels, in_channels       # first block reads the raw image channels
    for rb in raw["blocks"]:
        s1, t1 = fold_bn(rb["b1"], *rb["bn1"])
        s2, t2 = fold_bn(rb["b2"], *rb["bn2"])
        s3, t3 = fold_bn(rb["b3"], *rb["bn3"])
        w1m = jnp.transpose(rb["w1"], (2, 3, 1, 0)) * s1[None, None, None, :]  # (3,3,cin,planes)
        w1p = jnp.zeros((3, 3, cin_pad, P), jnp.float32).at[:, :, :cin, :planes].set(w1m)
        w1p = w1p.reshape(9 * cin_pad, P)
        w2m = rb["w2"][:, :, 0, 0].T * s2[None, :]
        w3m = rb["w3"][:, :, 0, 0].T * s3[None, :]
        folded["blocks"].append(dict(
            w1m=w1p.astype(jnp.bfloat16),
            t1=pad_vec(t1, P).astype(jnp.float32),
            w2m=pad_mat(w2m, P, P).astype(jnp.bfloat16),
            t2=pad_vec(t2, P).astype(jnp.float32),
            w3m=pad_mat(w3m, P, P).astype(jnp.bfloat16),
            t3=pad_vec(t3, P).astype(jnp.float32)))
        cin, cin_pad = planes, P

    sh, th = fold_bn(raw["head"]["b"], *raw["head"]["bn"])
    whm = raw["head"]["w"][:, :, 0, 0].T * sh[None, :]                       # (planes, 2)
    folded["head"] = dict(wm=pad_mat(whm, P, LANE).astype(jnp.bfloat16),
                          t=pad_vec(th, LANE).astype(jnp.float32))
    return raw, folded


# ---------------------------------------------------------------------------
# Forward passes
# ---------------------------------------------------------------------------
@jax.jit
def nin_binary_forward(x_nchw, folded):
    x = jnp.transpose(x_nchw, (0, 2, 3, 1)).astype(jnp.bfloat16)   # NCHW -> NHWC, bf16 MXU inputs
    blocks = folded["blocks"]
    n_blocks = len(blocks)
    out = None
    for bi, p in enumerate(blocks):
        N = x.shape[0]
        patches, Ho, Wo = im2col_3x3_s2_p1(x)
        K = patches.shape[-1]
        if bi < n_blocks - 1:
            h = fused_nin_block(patches.reshape(N * Ho * Wo, K),
                                p["w1m"], p["t1"], p["w2m"], p["t2"], p["w3m"], p["t3"])
            x = h.reshape(N, Ho, Wo, -1)
        else:
            out = fused_nin_block_head(
                patches.reshape(N, Ho * Wo, K),
                p["w1m"], p["t1"], p["w2m"], p["t2"], p["w3m"], p["t3"],
                folded["head"]["wm"], folded["head"]["t"])
    return out


def reference_forward(x_nchw, raw):
    """Pure-JAX f32 reference (lax.conv) for correctness checking."""
    def conv(x, w, b, stride, pad):
        y = lax.conv_general_dilated(
            x, w, (stride, stride), [(pad, pad), (pad, pad)],
            dimension_numbers=("NCHW", "OIHW", "NCHW"))
        return y + b[None, :, None, None]

    def bn(x, g, be, m, v):
        return (g[None, :, None, None] * (x - m[None, :, None, None])
                / jnp.sqrt(v[None, :, None, None] + EPS) + be[None, :, None, None])

    h = x_nchw
    for rb in raw["blocks"]:
        h = jnp.maximum(bn(conv(h, rb["w1"], rb["b1"], 2, 1), *rb["bn1"]), 0.0)
        h = jnp.maximum(bn(conv(h, rb["w2"], rb["b2"], 1, 0), *rb["bn2"]), 0.0)
        h = jnp.maximum(bn(conv(h, rb["w3"], rb["b3"], 1, 0), *rb["bn3"]), 0.0)
    h = jnp.maximum(bn(conv(h, raw["head"]["w"], raw["head"]["b"], 1, 0), *raw["head"]["bn"]), 0.0)
    pooled = jnp.mean(h, axis=(2, 3))  # adaptive avg pool to (1,1) then squeeze
    return pooled[:, 1] - pooled[:, 0]


# ---------------------------------------------------------------------------
if __name__ == "__main__":
    key = jax.random.PRNGKey(0)
    kx, kp = jax.random.split(key)

    # Small config: depth=2, width=2, base_width=8 -> planes=16 (padded to 128 lanes); 2 logits.
    N, C_IN, H, W = 2, 3, 16, 16
    DEPTH, WIDTH, BASE_WIDTH = 2, 2, 8

    x = jax.random.normal(kx, (N, C_IN, H, W), jnp.float32)  # PyTorch-style NCHW input
    raw, folded = make_params(kp, C_IN, DEPTH, WIDTH, BASE_WIDTH)

    out = nin_binary_forward(x, folded)
    out = jax.block_until_ready(out)

    ref = reference_forward(x, raw)
    assert out.shape == (N,), f"unexpected output shape {out.shape}"
    # bf16 MXU inputs vs. the f32 lax.conv reference -> slightly relaxed tolerance.
    assert jnp.allclose(out, ref, rtol=3e-2, atol=3e-2), (out, ref)

    print("KERNEL_OK")
</pallas_src>

<mosaic_0001>
module attributes {stable_mosaic.version = 11 : i64} {
  func.func @nin_block_kernel(%arg0: i32, %arg1: memref<64x27xbf16, #tpu.memory_space<vmem>>, %arg2: memref<27x128xbf16, #tpu.memory_space<vmem>>, %arg3: memref<1x128xf32, #tpu.memory_space<vmem>>, %arg4: memref<128x128xbf16, #tpu.memory_space<vmem>>, %arg5: memref<1x128xf32, #tpu.memory_space<vmem>>, %arg6: memref<128x128xbf16, #tpu.memory_space<vmem>>, %arg7: memref<1x128xf32, #tpu.memory_space<vmem>>, %arg8: memref<64x128xbf16, #tpu.memory_space<vmem>>) attributes {dimension_semantics = [#tpu.dimension_semantics<parallel>], iteration_bounds = array<i64: 2>, scalar_prefetch = 0 : i64, scratch_operands = 0 : i64, tpu.core_type = #tpu.core_type<tc>, window_params = [{transform_indices = @transform_0, window_bounds = array<i64: 64, 27>}, {pipeline_mode = #tpu.pipeline_mode<synchronous>, transform_indices = @transform_1, window_bounds = array<i64: 27, 128>}, {pipeline_mode = #tpu.pipeline_mode<synchronous>, transform_indices = @transform_2, window_bounds = array<i64: 1, 128>}, {pipeline_mode = #tpu.pipeline_mode<synchronous>, transform_indices = @transform_3, window_bounds = array<i64: 128, 128>}, {pipeline_mode = #tpu.pipeline_mode<synchronous>, transform_indices = @transform_4, window_bounds = array<i64: 1, 128>}, {pipeline_mode = #tpu.pipeline_mode<synchronous>, transform_indices = @transform_5, window_bounds = array<i64: 128, 128>}, {pipeline_mode = #tpu.pipeline_mode<synchronous>, transform_indices = @transform_6, window_bounds = array<i64: 1, 128>}, {transform_indices = @transform_7, window_bounds = array<i64: 64, 128>}]} {
    %c0 = arith.constant 0 : index
    %c0_0 = arith.constant 0 : index
    %0 = vector.load %arg1[%c0, %c0_0] : memref<64x27xbf16, #tpu.memory_space<vmem>>, vector<64x27xbf16>
    %c0_1 = arith.constant 0 : index
    %c0_2 = arith.constant 0 : index
    %1 = vector.load %arg2[%c0_1, %c0_2] : memref<27x128xbf16, #tpu.memory_space<vmem>>, vector<27x128xbf16>
    %cst = arith.constant dense<0.000000e+00> : vector<64x128xf32>
    %2 = tpu.matmul %0, %1, %cst {dimension_numbers = #tpu.dot_dimension_numbers<[1], [0], [0], [1], [0, 0, 1, 1], [], []>} : vector<64x27xbf16>, vector<27x128xbf16>, vector<64x128xf32> -> vector<64x128xf32>
    %c0_3 = arith.constant 0 : index
    %c0_4 = arith.constant 0 : index
    %3 = vector.load %arg3[%c0_3, %c0_4] : memref<1x128xf32, #tpu.memory_space<vmem>>, vector<1x128xf32>
    %4 = vector.broadcast %3 : vector<1x128xf32> to vector<64x128xf32>
    %5 = arith.addf %2, %4 : vector<64x128xf32>
    %cst_5 = arith.constant 0.000000e+00 : f32
    %6 = vector.broadcast %cst_5 : f32 to vector<64x128xf32>
    %7 = arith.maximumf %5, %6 : vector<64x128xf32>
    %8 = arith.truncf %7 : vector<64x128xf32> to vector<64x128xbf16>
    %c0_6 = arith.constant 0 : index
    %c0_7 = arith.constant 0 : index
    %9 = vector.load %arg4[%c0_6, %c0_7] : memref<128x128xbf16, #tpu.memory_space<vmem>>, vector<128x128xbf16>
    %cst_8 = arith.constant dense<0.000000e+00> : vector<64x128xf32>
    %10 = tpu.matmul %8, %9, %cst_8 {dimension_numbers = #tpu.dot_dimension_numbers<[1], [0], [0], [1], [0, 0, 1, 1], [], []>} : vector<64x128xbf16>, vector<128x128xbf16>, vector<64x128xf32> -> vector<64x128xf32>
    %c0_9 = arith.constant 0 : index
    %c0_10 = arith.constant 0 : index
    %11 = vector.load %arg5[%c0_9, %c0_10] : memref<1x128xf32, #tpu.memory_space<vmem>>, vector<1x128xf32>
    %12 = vector.broadcast %11 : vector<1x128xf32> to vector<64x128xf32>
    %13 = arith.addf %10, %12 : vector<64x128xf32>
    %cst_11 = arith.constant 0.000000e+00 : f32
    %14 = vector.broadcast %cst_11 : f32 to vector<64x128xf32>
    %15 = arith.maximumf %13, %14 : vector<64x128xf32>
    %16 = arith.truncf %15 : vector<64x128xf32> to vector<64x128xbf16>
    %c0_12 = arith.constant 0 : index
    %c0_13 = arith.constant 0 : index
    %17 = vector.load %arg6[%c0_12, %c0_13] : memref<128x128xbf16, #tpu.memory_space<vmem>>, vector<128x128xbf16>
    %cst_14 = arith.constant dense<0.000000e+00> : vector<64x128xf32>
    %18 = tpu.matmul %16, %17, %cst_14 {dimension_numbers = #tpu.dot_dimension_numbers<[1], [0], [0], [1], [0, 0, 1, 1], [], []>} : vector<64x128xbf16>, vector<128x128xbf16>, vector<64x128xf32> -> vector<64x128xf32>
    %c0_15 = arith.constant 0 : index
    %c0_16 = arith.constant 0 : index
    %19 = vector.load %arg7[%c0_15, %c0_16] : memref<1x128xf32, #tpu.memory_space<vmem>>, vector<1x128xf32>
    %20 = vector.broadcast %19 : vector<1x128xf32> to vector<64x128xf32>
    %21 = arith.addf %18, %20 : vector<64x128xf32>
    %cst_17 = arith.constant 0.000000e+00 : f32
    %22 = vector.broadcast %cst_17 : f32 to vector<64x128xf32>
    %23 = arith.maximumf %21, %22 : vector<64x128xf32>
    %24 = arith.truncf %23 : vector<64x128xf32> to vector<64x128xbf16>
    %c0_18 = arith.constant 0 : index
    %c0_19 = arith.constant 0 : index
    %25 = vector.load %arg8[%c0_18, %c0_19] : memref<64x128xbf16, #tpu.memory_space<vmem>>, vector<64x128xbf16>
    tpu.vector_store %arg8[%c0_18, %c0_19], %24 {strides = array<i32>} : memref<64x128xbf16, #tpu.memory_space<vmem>>, vector<64x128xbf16>,
    return
  }
  func.func @transform_0(%arg0: i32) -> (i32, i32) {
    %c0_i32 = arith.constant 0 : i32
    %c0_i32_0 = arith.constant 0 : i32
    return %arg0, %c0_i32 : i32, i32
  }
  func.func @transform_1(%arg0: i32) -> (i32, i32) {
    %c0_i32 = arith.constant 0 : i32
    %c0_i32_0 = arith.constant 0 : i32
    %c0_i32_1 = arith.constant 0 : i32
    return %c0_i32, %c0_i32_0 : i32, i32
  }
  func.func @transform_2(%arg0: i32) -> (i32, i32) {
    %c0_i32 = arith.constant 0 : i32
    %c0_i32_0 = arith.constant 0 : i32
    %c0_i32_1 = arith.constant 0 : i32
    return %c0_i32, %c0_i32_0 : i32, i32
  }
  func.func @transform_3(%arg0: i32) -> (i32, i32) {
    %c0_i32 = arith.constant 0 : i32
    %c0_i32_0 = arith.constant 0 : i32
    %c0_i32_1 = arith.constant 0 : i32
    return %c0_i32, %c0_i32_0 : i32, i32
  }
  func.func @transform_4(%arg0: i32) -> (i32, i32) {
    %c0_i32 = arith.constant 0 : i32
    %c0_i32_0 = arith.constant 0 : i32
    %c0_i32_1 = arith.constant 0 : i32
    return %c0_i32, %c0_i32_0 : i32, i32
  }
  func.func @transform_5(%arg0: i32) -> (i32, i32) {
    %c0_i32 = arith.constant 0 : i32
    %c0_i32_0 = arith.constant 0 : i32
    %c0_i32_1 = arith.constant 0 : i32
    return %c0_i32, %c0_i32_0 : i32, i32
  }
  func.func @transform_6(%arg0: i32) -> (i32, i32) {
    %c0_i32 = arith.constant 0 : i32
    %c0_i32_0 = arith.constant 0 : i32
    %c0_i32_1 = arith.constant 0 : i32
    return %c0_i32, %c0_i32_0 : i32, i32
  }
  func.func @transform_7(%arg0: i32) -> (i32, i32) {
    %c0_i32 = arith.constant 0 : i32
    %c0_i32_0 = arith.constant 0 : i32
    return %arg0, %c0_i32 : i32, i32
  }
}

module attributes {stable_mosaic.version = 11 : i64} {
  func.func @nin_block_head_kernel(%arg0: i32, %arg1: i32, %arg2: memref<1x16x1152xbf16, #tpu.memory_space<vmem>>, %arg3: memref<1152x128xbf16, #tpu.memory_space<vmem>>, %arg4: memref<1x128xf32, #tpu.memory_space<vmem>>, %arg5: memref<128x128xbf16, #tpu.memory_space<vmem>>, %arg6: memref<1x128xf32, #tpu.memory_space<vmem>>, %arg7: memref<128x128xbf16, #tpu.memory_space<vmem>>, %arg8: memref<1x128xf32, #tpu.memory_space<vmem>>, %arg9: memref<128x128xbf16, #tpu.memory_space<vmem>>, %arg10: memref<1x128xf32, #tpu.memory_space<vmem>>, %arg11: memref<1x8x128xf32, #tpu.memory_space<vmem>>, %arg12: memref<1x128xf32, #tpu.memory_space<vmem>>) attributes {dimension_semantics = [#tpu.dimension_semantics<parallel>, #tpu.dimension_semantics<arbitrary>], iteration_bounds = array<i64: 2, 1>, scalar_prefetch = 0 : i64, scratch_operands = 1 : i64, tpu.core_type = #tpu.core_type<tc>, window_params = [{transform_indices = @transform_0, window_bounds = array<i64: 1, 16, 1152>}, {pipeline_mode = #tpu.pipeline_mode<synchronous>, transform_indices = @transform_1, window_bounds = array<i64: 1152, 128>}, {pipeline_mode = #tpu.pipeline_mode<synchronous>, transform_indices = @transform_2, window_bounds = array<i64: 1, 128>}, {pipeline_mode = #tpu.pipeline_mode<synchronous>, transform_indices = @transform_3, window_bounds = array<i64: 128, 128>}, {pipeline_mode = #tpu.pipeline_mode<synchronous>, transform_indices = @transform_4, window_bounds = array<i64: 1, 128>}, {pipeline_mode = #tpu.pipeline_mode<synchronous>, transform_indices = @transform_5, window_bounds = array<i64: 128, 128>}, {pipeline_mode = #tpu.pipeline_mode<synchronous>, transform_indices = @transform_6, window_bounds = array<i64: 1, 128>}, {pipeline_mode = #tpu.pipeline_mode<synchronous>, transform_indices = @transform_7, window_bounds = array<i64: 128, 128>}, {pipeline_mode = #tpu.pipeline_mode<synchronous>, transform_indices = @transform_8, window_bounds = array<i64: 1, 128>}, {transform_indices = @transform_9, window_bounds = array<i64: 1, 8, 128>}]} {
    %c0_i32 = arith.constant 0 : i32
    %0 = arith.cmpi eq, %arg1, %c0_i32 : i32
    %1 = arith.extui %0 : i1 to i32
    %c0_i32_0 = arith.constant 0 : i32
    %2 = arith.cmpi ne, %1, %c0_i32_0 : i32
    scf.if %2 {
      %cst_33 = arith.constant 0.000000e+00 : f32
      %47 = vector.broadcast %cst_33 : f32 to vector<1x128xf32>
      %c0_34 = arith.constant 0 : index
      %c0_35 = arith.constant 0 : index
      %48 = vector.load %arg12[%c0_34, %c0_35] : memref<1x128xf32, #tpu.memory_space<vmem>>, vector<1x128xf32>
      tpu.vector_store %arg12[%c0_34, %c0_35], %47 {strides = array<i32>} : memref<1x128xf32, #tpu.memory_space<vmem>>, vector<1x128xf32>,
    } else {
    }
    %c0 = arith.constant 0 : index
    %c0_1 = arith.constant 0 : index
    %c0_2 = arith.constant 0 : index
    %3 = vector.load %arg2[%c0, %c0_1, %c0_2] : memref<1x16x1152xbf16, #tpu.memory_space<vmem>>, vector<1x16x1152xbf16>
    %4 = vector.shape_cast %3 : vector<1x16x1152xbf16> to vector<16x1152xbf16>
    %c0_3 = arith.constant 0 : index
    %c0_4 = arith.constant 0 : index
    %5 = vector.load %arg3[%c0_3, %c0_4] : memref<1152x128xbf16, #tpu.memory_space<vmem>>, vector<1152x128xbf16>
    %cst = arith.constant dense<0.000000e+00> : vector<16x128xf32>
    %6 = tpu.matmul %4, %5, %cst {dimension_numbers = #tpu.dot_dimension_numbers<[1], [0], [0], [1], [0, 0, 1, 1], [], []>} : vector<16x1152xbf16>, vector<1152x128xbf16>, vector<16x128xf32> -> vector<16x128xf32>
    %c0_5 = arith.constant 0 : index
    %c0_6 = arith.constant 0 : index
    %7 = vector.load %arg4[%c0_5, %c0_6] : memref<1x128xf32, #tpu.memory_space<vmem>>, vector<1x128xf32>
    %8 = vector.broadcast %7 : vector<1x128xf32> to vector<16x128xf32>
    %9 = arith.addf %6, %8 : vector<16x128xf32>
    %cst_7 = arith.constant 0.000000e+00 : f32
    %10 = vector.broadcast %cst_7 : f32 to vector<16x128xf32>
    %11 = arith.maximumf %9, %10 : vector<16x128xf32>
    %12 = arith.truncf %11 : vector<16x128xf32> to vector<16x128xbf16>
    %c0_8 = arith.constant 0 : index
    %c0_9 = arith.constant 0 : index
    %13 = vector.load %arg5[%c0_8, %c0_9] : memref<128x128xbf16, #tpu.memory_space<vmem>>, vector<128x128xbf16>
    %cst_10 = arith.constant dense<0.000000e+00> : vector<16x128xf32>
    %14 = tpu.matmul %12, %13, %cst_10 {dimension_numbers = #tpu.dot_dimension_numbers<[1], [0], [0], [1], [0, 0, 1, 1], [], []>} : vector<16x128xbf16>, vector<128x128xbf16>, vector<16x128xf32> -> vector<16x128xf32>
    %c0_11 = arith.constant 0 : index
    %c0_12 = arith.constant 0 : index
    %15 = vector.load %arg6[%c0_11, %c0_12] : memref<1x128xf32, #tpu.memory_space<vmem>>, vector<1x128xf32>
    %16 = vector.broadcast %15 : vector<1x128xf32> to vector<16x128xf32>
    %17 = arith.addf %14, %16 : vector<16x128xf32>
    %cst_13 = arith.constant 0.000000e+00 : f32
    %18 = vector.broadcast %cst_13 : f32 to vector<16x128xf32>
    %19 = arith.maximumf %17, %18 : vector<16x128xf32>
    %20 = arith.truncf %19 : vector<16x128xf32> to vector<16x128xbf16>
    %c0_14 = arith.constant 0 : index
    %c0_15 = arith.constant 0 : index
    %21 = vector.load %arg7[%c0_14, %c0_15] : memref<128x128xbf16, #tpu.memory_space<vmem>>, vector<128x128xbf16>
    %cst_16 = arith.constant dense<0.000000e+00> : vector<16x128xf32>
    %22 = tpu.matmul %20, %21, %cst_16 {dimension_numbers = #tpu.dot_dimension_numbers<[1], [0], [0], [1], [0, 0, 1, 1], [], []>} : vector<16x128xbf16>, vector<128x128xbf16>, vector<16x128xf32> -> vector<16x128xf32>
    %c0_17 = arith.constant 0 : index
    %c0_18 = arith.constant 0 : index
    %23 = vector.load %arg8[%c0_17, %c0_18] : memref<1x128xf32, #tpu.memory_space<vmem>>, vector<1x128xf32>
    %24 = vector.broadcast %23 : vector<1x128xf32> to vector<16x128xf32>
    %25 = arith.addf %22, %24 : vector<16x128xf32>
    %cst_19 = arith.constant 0.000000e+00 : f32
    %26 = vector.broadcast %cst_19 : f32 to vector<16x128xf32>
    %27 = arith.maximumf %25, %26 : vector<16x128xf32>
    %28 = arith.truncf %27 : vector<16x128xf32> to vector<16x128xbf16>
    %c0_20 = arith.constant 0 : index
    %c0_21 = arith.constant 0 : index
    %29 = vector.load %arg9[%c0_20, %c0_21] : memref<128x128xbf16, #tpu.memory_space<vmem>>, vector<128x128xbf16>
    %cst_22 = arith.constant dense<0.000000e+00> : vector<16x128xf32>
    %30 = tpu.matmul %28, %29, %cst_22 {dimension_numbers = #tpu.dot_dimension_numbers<[1], [0], [0], [1], [0, 0, 1, 1], [], []>} : vector<16x128xbf16>, vector<128x128xbf16>, vector<16x128xf32> -> vector<16x128xf32>
    %c0_23 = arith.constant 0 : index
    %c0_24 = arith.constant 0 : index
    %31 = vector.load %arg10[%c0_23, %c0_24] : memref<1x128xf32, #tpu.memory_space<vmem>>, vector<1x128xf32>
    %32 = vector.broadcast %31 : vector<1x128xf32> to vector<16x128xf32>
    %33 = arith.addf %30, %32 : vector<16x128xf32>
    %cst_25 = arith.constant 0.000000e+00 : f32
    %34 = vector.broadcast %cst_25 : f32 to vector<16x128xf32>
    %35 = arith.maximumf %33, %34 : vector<16x128xf32>
    %c16_i32 = arith.constant 16 : i32
    %36 = arith.muli %arg1, %c16_i32 : i32
    %c16_i32_26 = arith.constant 16 : i32
    %37 = arith.subi %c16_i32_26, %36 : i32
    %c16_i32_27 = arith.constant 16 : i32
    %38 = arith.cmpi sge, %37, %c16_i32_27 : i32
    %39 = arith.extui %38 : i1 to i32
    %c0_i32_28 = arith.constant 0 : i32
    %40 = arith.cmpi ne, %39, %c0_i32_28 : i32
    scf.if %40 {
      %c0_33 = arith.constant 0 : index
      %c0_34 = arith.constant 0 : index
      %47 = vector.load %arg12[%c0_33, %c0_34] : memref<1x128xf32, #tpu.memory_space<vmem>>, vector<1x128xf32>
      %cst_35 = arith.constant dense<0.000000e+00> : vector<128xf32>
      %48 = vector.multi_reduction <add>, %35, %cst_35 [0] : vector<16x128xf32> to vector<128xf32>
      %49 = vector.shape_cast %48 : vector<128xf32> to vector<1x128xf32>
      %50 = arith.addf %47, %49 : vector<1x128xf32>
      %c0_36 = arith.constant 0 : index
      %c0_37 = arith.constant 0 : index
      %51 = vector.load %arg12[%c0_36, %c0_37] : memref<1x128xf32, #tpu.memory_space<vmem>>, vector<1x128xf32>
      tpu.vector_store %arg12[%c0_36, %c0_37], %50 {strides = array<i32>} : memref<1x128xf32, #tpu.memory_space<vmem>>, vector<1x128xf32>,
    } else {
    }
    %c16_i32_29 = arith.constant 16 : i32
    %41 = arith.cmpi slt, %37, %c16_i32_29 : i32
    %42 = arith.extui %41 : i1 to i32
    %c0_i32_30 = arith.constant 0 : i32
    %43 = arith.cmpi ne, %42, %c0_i32_30 : i32
    scf.if %43 {
      %47 = tpu.iota {dimensions = array<i32: 0>} : vector<16x1xi32>
      %c0_33 = arith.constant 0 : index
      %c0_34 = arith.constant 0 : index
      %48 = vector.load %arg12[%c0_33, %c0_34] : memref<1x128xf32, #tpu.memory_space<vmem>>, vector<1x128xf32>
      %49 = vector.broadcast %37 : i32 to vector<16x1xi32>
      %50 = arith.cmpi slt, %47, %49 : vector<16x1xi32>
      %cst_35 = arith.constant 0.000000e+00 : f32
      %51 = vector.shape_cast %50 : vector<16x1xi1> to vector<16x1xi1>
      %52 = vector.broadcast %51 : vector<16x1xi1> to vector<16x128xi1>
      %53 = vector.broadcast %cst_35 : f32 to vector<16x128xf32>
      %54 = arith.select %52, %35, %53 : vector<16x128xi1>, vector<16x128xf32>
      %cst_36 = arith.constant dense<0.000000e+00> : vector<128xf32>
      %55 = vector.multi_reduction <add>, %54, %cst_36 [0] : vector<16x128xf32> to vector<128xf32>
      %56 = vector.shape_cast %55 : vector<128xf32> to vector<1x128xf32>
      %57 = arith.addf %48, %56 : vector<1x128xf32>
      %c0_37 = arith.constant 0 : index
      %c0_38 = arith.constant 0 : index
      %58 = vector.load %arg12[%c0_37, %c0_38] : memref<1x128xf32, #tpu.memory_space<vmem>>, vector<1x128xf32>
      tpu.vector_store %arg12[%c0_37, %c0_38], %57 {strides = array<i32>} : memref<1x128xf32, #tpu.memory_space<vmem>>, vector<1x128xf32>,
    } else {
    }
    %c0_i32_31 = arith.constant 0 : i32
    %44 = arith.cmpi eq, %arg1, %c0_i32_31 : i32
    %45 = arith.extui %44 : i1 to i32
    %c0_i32_32 = arith.constant 0 : i32
    %46 = arith.cmpi ne, %45, %c0_i32_32 : i32
    scf.if %46 {
      %c0_33 = arith.constant 0 : index
      %c0_34 = arith.constant 0 : index
      %47 = vector.load %arg12[%c0_33, %c0_34] : memref<1x128xf32, #tpu.memory_space<vmem>>, vector<1x128xf32>
      %cst_35 = arith.constant 6.250000e-02 : f32
      %48 = vector.broadcast %cst_35 : f32 to vector<1x128xf32>
      %49 = arith.mulf %47, %48 : vector<1x128xf32>
      %50 = vector.extract_strided_slice %49 {offsets = [0, 1], sizes = [1, 1], strides = [1, 1]} : vector<1x128xf32> to vector<1x1xf32>
      %51 = vector.extract_strided_slice %49 {offsets = [0, 0], sizes = [1, 1], strides = [1, 1]} : vector<1x128xf32> to vector<1x1xf32>
      %52 = arith.subf %50, %51 : vector<1x1xf32>
      %53 = vector.shape_cast %52 : vector<1x1xf32> to vector<1x1x1xf32>
      %54 = vector.shape_cast %53 : vector<1x1x1xf32> to vector<1x1x1xf32>
      %55 = vector.broadcast %54 : vector<1x1x1xf32> to vector<1x8x128xf32>
      %c0_36 = arith.constant 0 : index
      %c0_37 = arith.constant 0 : index
      %c0_38 = arith.constant 0 : index
      %56 = vector.load %arg11[%c0_36, %c0_37, %c0_38] : memref<1x8x128xf32, #tpu.memory_space<vmem>>, vector<1x8x128xf32>
      tpu.vector_store %arg11[%c0_36, %c0_37, %c0_38], %55 {strides = array<i32>} : memref<1x8x128xf32, #tpu.memory_space<vmem>>, vector<1x8x128xf32>,
    } else {
    }
    return
  }
  func.func @transform_0(%arg0: i32, %arg1: i32) -> (i32, i32, i32) {
    %c0_i32 = arith.constant 0 : i32
    %c0_i32_0 = arith.constant 0 : i32
    return %arg0, %arg1, %c0_i32 : i32, i32, i32
  }
  func.func @transform_1(%arg0: i32, %arg1: i32) -> (i32, i32) {
    %c0_i32 = arith.constant 0 : i32
    %c0_i32_0 = arith.constant 0 : i32
    %c0_i32_1 = arith.constant 0 : i32
    return %c0_i32, %c0_i32_0 : i32, i32
  }
  func.func @transform_2(%arg0: i32, %arg1: i32) -> (i32, i32) {
    %c0_i32 = arith.constant 0 : i32
    %c0_i32_0 = arith.constant 0 : i32
    %c0_i32_1 = arith.constant 0 : i32
    return %c0_i32, %c0_i32_0 : i32, i32
  }
  func.func @transform_3(%arg0: i32, %arg1: i32) -> (i32, i32) {
    %c0_i32 = arith.constant 0 : i32
    %c0_i32_0 = arith.constant 0 : i32
    %c0_i32_1 = arith.constant 0 : i32
    return %c0_i32, %c0_i32_0 : i32, i32
  }
  func.func @transform_4(%arg0: i32, %arg1: i32) -> (i32, i32) {
    %c0_i32 = arith.constant 0 : i32
    %c0_i32_0 = arith.constant 0 : i32
    %c0_i32_1 = arith.constant 0 : i32
    return %c0_i32, %c0_i32_0 : i32, i32
  }
  func.func @transform_5(%arg0: i32, %arg1: i32) -> (i32, i32) {
    %c0_i32 = arith.constant 0 : i32
    %c0_i32_0 = arith.constant 0 : i32
    %c0_i32_1 = arith.constant 0 : i32
    return %c0_i32, %c0_i32_0 : i32, i32
  }
  func.func @transform_6(%arg0: i32, %arg1: i32) -> (i32, i32) {
    %c0_i32 = arith.constant 0 : i32
    %c0_i32_0 = arith.constant 0 : i32
    %c0_i32_1 = arith.constant 0 : i32
    return %c0_i32, %c0_i32_0 : i32, i32
  }
  func.func @transform_7(%arg0: i32, %arg1: i32) -> (i32, i32) {
    %c0_i32 = arith.constant 0 : i32
    %c0_i32_0 = arith.constant 0 : i32
    %c0_i32_1 = arith.constant 0 : i32
    return %c0_i32, %c0_i32_0 : i32, i32
  }
  func.func @transform_8(%arg0: i32, %arg1: i32) -> (i32, i32) {
    %c0_i32 = arith.constant 0 : i32
    %c0_i32_0 = arith.constant 0 : i32
    %c0_i32_1 = arith.constant 0 : i32
    return %c0_i32, %c0_i32_0 : i32, i32
  }
  func.func @transform_9(%arg0: i32, %arg1: i32) -> (i32, i32, i32) {
    %c0_i32 = arith.constant 0 : i32
    %c0_i32_0 = arith.constant 0 : i32
    %c0_i32_1 = arith.constant 0 : i32
    return %arg0, %c0_i32, %c0_i32_0 : i32, i32, i32
  }
}

</mosaic_0001>

<bundles_post_ra>
// kernel: nin_binary_forward.2
= control target key start
LH: loop header
LB: loop body
LE: loop exit
PB: predicated region body
PF: predicated region fallthrough
CT: control target
= control target key end

     0   :  { %s902_s24 = smov 0   ;;  %s996_s0 = inlined_call_operand.vmem [shape: bf16[128,27], index: 0, kind: input, shape index: {}]   ;;  %s997_s1 = inlined_call_operand.vmem [shape: bf16[27,128], index: 1, kind: input, shape index: {}]   ;;  %s998_s2 = inlined_call_operand.vmem [shape: f32[1,128], index: 2, kind: input, shape index: {}]   ;;  %s999_s3 = inlined_call_operand.vmem [shape: bf16[128,128], index: 3, kind: input, shape index: {}]   ;;  %s1000_s4 = inlined_call_operand.vmem [shape: f32[1,128], index: 4, kind: input, shape index: {}]   ;;  %s1001_s5 = inlined_call_operand.vmem [shape: bf16[128,128], index: 5, kind: input, shape index: {}]   ;;  %s1002_s6 = inlined_call_operand.vmem [shape: f32[1,128], index: 6, kind: input, shape index: {}]   ;;  %s1003_s7 = inlined_call_operand.vmem [shape: bf16[128,128], index: 7, kind: output, shape index: {}]  }
   0x1 LB: > { %s677_s25 = sadd.s32 4294967295, %s859_s24   ;;  %p681_p0 = scmp.ge.s32.totalorder %s859_s24, 1  ;;  %s859_s24 = sphi %s902_s24, %s17_s24  }
   0x2   : > { %p238_p1 = scmp.lt.s32.totalorder %s859_s24, 3 }
   0x4   : > { %p239_p2 = pnand %p681_p0, %p238_p1 }
   0x5   : > { %s682_s30 = sshll.u32 (!%p239_p2), %s677_s25, 3 }
   0x6   : > { %242 = sbr.rel (%p239_p2) target bundleno = 505 (0x1f9), region = 48  ;;  %p271_p3 = scmp.lt.s32.totalorder (!%p239_p2), %s682_s30, 15 }
   0xb   : > { %v708_v0 = vld [vmem:[%s997_s1 + $0x8] sm:$0xf]  ;;  %v785_v1 = vld [vmem:[%s997_s1 + $0x8] sm:$0x30]  ;;  %vm343_vm0 = vcmask 1044480   ;;  %vm344_vm1 = vcmask 1045504  }
   0xc   : > { %v709_v2 = vor.u32 %v785_v1, %v708_v0  ;;  %v861_v3 = vmov 65535   ;;  %s1005_s30 = smov (!%p271_p3, %s682_s30), 15  ;;  %v784_v7 = vld [vmem:[%s997_s1] sm:$0xff]  ;;  %vm330_vm2 = vcmask 220160   ;;  %v793_v10 = vld [vmem:[%s999_s3 + $0x38] sm:$0xff]  ;;  %v792_v11 = vld [vmem:[%s999_s3 + $0x30] sm:$0xff] }
   0xd   : > { %v345_v4 = vsel %vm343_vm0, 4294967295, %v861_v3  ;;  %s683_s10 = sshll.u32 %s1005_s30, 2  ;;  %459 = vmatpush.bf16.msra.mxu1 %v793_v10  ;;  %825 = vmatpush.bf16.msra.mxu3 %v793_v10  ;;  %v791_v12 = vld [vmem:[%s999_s3 + $0x28] sm:$0xff]  ;;  %v790_v13 = vld [vmem:[%s999_s3 + $0x20] sm:$0xff]  ;;  %v789_v16 = vld [vmem:[%s999_s3 + $0x18] sm:$0xff] }
   0xe   : > { %v346_v5 = vsel %vm344_vm1, %v345_v4, 0  ;;  %s274_s13 = scalar_lea.vmem %s996_s0, %s683_s10  ;;  %v788_v17 = vld [vmem:[%s999_s3 + $0x10] sm:$0xff]  ;;  %v787_v18 = vld [vmem:[%s999_s3 + $0x8] sm:$0xff]  ;;  %v786_v19 = vld [vmem:[%s999_s3] sm:$0xff]  ;;  %s280_s14 = scalar_lea.vmem %s1003_s7, %s683_s10 }
   0xf   : > { %v348_v6 = vand.u32 %v709_v2, %v346_v5  ;;  %v780_v8 = vld [vmem:[%s274_s13] sm:$0xff]  ;;  %v781_v9 = vld [vmem:[%s274_s13 + $0x8] sm:$0xff]  ;;  %v782_v14 = vld [vmem:[%s274_s13 + $0x10] sm:$0xff] }
  0x10   : > { %v783_v15 = vld [vmem:[%s274_s13 + $0x18] sm:$0xff]  ;;  %v850_v21 = vld [vmem:[%s998_s2] ss:$0 sm:$0xff]  ;;  %v800_v37 = vld [vmem:[%s1001_s5 + $0x30] sm:$0xff] }
  0x11   : > { %356 = vmatpush.bf16.msra.mxu0 %v348_v6  ;;  %460 = vmatpush.bf16.msra.mxu1 %v792_v11  ;;  %v801_v35 = vld [vmem:[%s1001_s5 + $0x38] sm:$0xff]  ;;  %v799_v38 = vld [vmem:[%s1001_s5 + $0x28] sm:$0xff]  ;;  %v798_v42 = vld [vmem:[%s1001_s5 + $0x20] sm:$0xff] }
  0x12   : > { %826 = vmatpush.bf16.msra.mxu3 %v792_v11  ;;  %833 = vmatpush.bf16.msra.mxu2 %v801_v35  ;;  %v797_v53 = vld [vmem:[%s1001_s5 + $0x18] sm:$0xff]  ;;  %v796_v54 = vld [vmem:[%s1001_s5 + $0x10] sm:$0xff]  ;;  %v795_v55 = vld [vmem:[%s1001_s5 + $0x8] sm:$0xff] }
  0x13   : > { %v794_v56 = vld [vmem:[%s1001_s5] sm:$0xff] }
  0x14   : > { %v851_v58 = vld [vmem:[%s1000_s4] ss:$0 sm:$0xff] }
  0x15   : > { %357 = vmatpush.bf16.msra.mxu0 %v784_v7  ;;  %461 = vmatpush.bf16.msra.mxu1 %v791_v12 }
  0x16   : > { %827 = vmatpush.bf16.msra.mxu3 %v791_v12  ;;  %834 = vmatpush.bf16.msra.mxu2 %v800_v37 }
  0x18   : > { %710 = vmatmul.msk.bf16.vlgmr.msra.gmra.mxu0 %vm330_vm2, %v780_v8 }
  0x19   : > { %462 = vmatpush.bf16.msra.mxu1 %v790_v13 }
  0x1a   : > { %828 = vmatpush.bf16.msra.mxu3 %v790_v13  ;;  %835 = vmatpush.bf16.msra.mxu2 %v799_v38 }
  0x1d   : > { %463 = vmatpush.bf16.msra.mxu1 %v789_v16 }
  0x1e   : > { %829 = vmatpush.bf16.msra.mxu3 %v789_v16  ;;  %836 = vmatpush.bf16.msra.mxu2 %v798_v42 }
  0x21   : > { %464 = vmatpush.bf16.msra.mxu1 %v788_v17 }
  0x22   : > { %830 = vmatpush.bf16.msra.mxu3 %v788_v17  ;;  %837 = vmatpush.bf16.msra.mxu2 %v797_v53 }
  0x25   : > { %465 = vmatpush.bf16.msra.mxu1 %v787_v18 }
  0x26   : > { %831 = vmatpush.bf16.msra.mxu3 %v787_v18  ;;  %838 = vmatpush.bf16.msra.mxu2 %v796_v54 }
  0x28   : > { %711 = vmatmul.msk.bf16.gmra.mxu0 %vm330_vm2, %v781_v9 }
  0x29   : > { %466 = vmatpush.bf16.msra.mxu1 %v786_v19 }
  0x2a   : > { %832 = vmatpush.bf16.msra.mxu3 %v786_v19  ;;  %839 = vmatpush.bf16.msra.mxu2 %v795_v55 }
  0x2d   : > { %568 = vmatpush.bf16.msrb.mxu1 %v801_v35 }
  0x2e   : > { %840 = vmatpush.bf16.msra.mxu2 %v794_v56 }
  0x31   : > { %569 = vmatpush.bf16.msrb.mxu1 %v800_v37 }
  0x35   : > { %570 = vmatpush.bf16.msrb.mxu1 %v799_v38 }
  0x38   : > { %712 = vmatmul.msk.bf16.gmra.mxu0 %vm330_vm2, %v782_v14 }
  0x39   : > { %571 = vmatpush.bf16.msrb.mxu1 %v798_v42 }
  0x3d   : > { %572 = vmatpush.bf16.msrb.mxu1 %v797_v53 }
  0x41   : > { %573 = vmatpush.bf16.msrb.mxu1 %v796_v54 }
  0x45   : > { %574 = vmatpush.bf16.msrb.mxu1 %v795_v55 }
  0x48   : > { %713 = vmatmul.msk.bf16.gmra.mxu0 %vm330_vm2, %v783_v15 }
  0x49   : > { %575 = vmatpush.bf16.msrb.mxu1 %v794_v56 }
  0x95   : > { %v359_v20 = vpop.f32.mrf.mxu0 }
  0x96   : > { %v360_v22 = vadd.f32 %v850_v21, %v359_v20 }
  0x98   : > { %v379_v25 = vmax.f32 %v360_v22, 0.0 }
  0x9d   : > { %v361_v23 = vpop.f32.mrf.mxu0 }
  0x9e   : > { %v362_v24 = vadd.f32 %v850_v21, %v361_v23  ;;  %v852_v23 = vld [vmem:[%s1002_s6] ss:$0 sm:$0xff] }
  0xa0   : > { %v380_v26 = vmax.f32 %v362_v24, 0.0 }
  0xa2   : > { %v387_v27 = vpack.c.bf16 %v380_v26, %v379_v25 }
  0xa4   : > { %467 = vmatmul.bf16.vlgmr.msra.gmra.mxu1 %v387_v27 }
  0xa5   : > { %v364_v28 = vpop.f32.mrf.mxu0 }
  0xa6   : > { %v365_v29 = vadd.f32 %v850_v21, %v364_v28 }
  0xa8   : > { %v381_v32 = vmax.f32 %v365_v29, 0.0 }
  0xad   : > { %v366_v30 = vpop.f32.mrf.mxu0 }
  0xae   : > { %v367_v31 = vadd.f32 %v850_v21, %v366_v30 }
  0xb0   : > { %v382_v33 = vmax.f32 %v367_v31, 0.0 }
  0xb2   : > { %v388_v34 = vpack.c.bf16 %v382_v33, %v381_v32 }
  0xb4   : > { %472 = vmatmul.bf16.vlgmr.msra.gmra.mxu3 %v388_v34 }
  0xb5   : > { %v369_v36 = vpop.f32.mrf.mxu0 }
  0xb6   : > { %v370_v39 = vadd.f32 %v850_v21, %v369_v36 }
  0xb8   : > { %v383_v43 = vmax.f32 %v370_v39, 0.0 }
  0xbd   : > { %v371_v40 = vpop.f32.mrf.mxu0 }
  0xbe   : > { %v372_v41 = vadd.f32 %v850_v21, %v371_v40 }
  0xc0   : > { %v384_v44 = vmax.f32 %v372_v41, 0.0 }
  0xc2   : > { %v389_v45 = vpack.c.bf16 %v384_v44, %v383_v43 }
  0xc4   : > { %477 = vmatmul.bf16.gmra.mxu3 %v389_v45 }
  0xc5   : > { %v374_v46 = vpop.f32.mrf.mxu0 }
  0xc6   : > { %v375_v47 = vadd.f32 %v850_v21, %v374_v46 }
  0xc8   : > { %v385_v50 = vmax.f32 %v375_v47, 0.0 }
  0xcd   : > { %v376_v48 = vpop.f32.mrf.mxu0 }
  0xce   : > { %v377_v49 = vadd.f32 %v850_v21, %v376_v48 }
  0xd0   : > { %v386_v51 = vmax.f32 %v377_v49, 0.0 }
  0xd2   : > { %v390_v52 = vpack.c.bf16 %v386_v51, %v385_v50 }
  0xd4   : > { %482 = vmatmul.bf16.gmra.mxu3 %v390_v52 }
 0x121   : > { %v468_v57 = vpop.f32.mrf.mxu1 }
 0x122   : > { %v469_v59 = vadd.f32 %v851_v58, %v468_v57 }
 0x124   : > { %v488_v62 = vmax.f32 %v469_v59, 0.0 }
 0x129   : > { %v470_v60 = vpop.f32.mrf.mxu1 }
 0x12a   : > { %v471_v61 = vadd.f32 %v851_v58, %v470_v60 }
 0x12c   : > { %v489_v63 = vmax.f32 %v471_v61, 0.0 }
 0x12e   : > { %v496_v0 = vpack.c.bf16 %v489_v63, %v488_v62 }
 0x130   : > { %576 = vmatmul.bf16.vlgmr.msrb.gmra.mxu1 %v496_v0 }
 0x137   : > { %v473_v1 = vpop.f32.mrf.mxu3 }
 0x138   : > { %v474_v2 = vadd.f32 %v851_v58, %v473_v1 }
 0x13a   : > { %v490_v5 = vmax.f32 %v474_v2, 0.0 }
 0x13f   : > { %v475_v3 = vpop.f32.mrf.mxu3 }
 0x140   : > { %v476_v4 = vadd.f32 %v851_v58, %v475_v3 }
 0x142   : > { %v491_v6 = vmax.f32 %v476_v4, 0.0 }
 0x144   : > { %v497_v7 = vpack.c.bf16 %v491_v6, %v490_v5 }
 0x146   : > { %581 = vmatmul.bf16.vlgmr.msra.gmra.mxu2 %v497_v7 }
 0x147   : > { %v478_v8 = vpop.f32.mrf.mxu3 }
 0x148   : > { %v479_v9 = vadd.f32 %v851_v58, %v478_v8 }
 0x14a   : > { %v492_v12 = vmax.f32 %v479_v9, 0.0 }
 0x14f   : > { %v480_v10 = vpop.f32.mrf.mxu3 }
 0x150   : > { %v481_v11 = vadd.f32 %v851_v58, %v480_v10 }
 0x152   : > { %v493_v13 = vmax.f32 %v481_v11, 0.0 }
 0x154   : > { %v498_v14 = vpack.c.bf16 %v493_v13, %v492_v12 }
 0x156   : > { %586 = vmatmul.bf16.gmra.mxu2 %v498_v14 }
 0x157   : > { %v483_v15 = vpop.f32.mrf.mxu3 }
 0x158   : > { %v484_v16 = vadd.f32 %v851_v58, %v483_v15 }
 0x15a   : > { %v494_v19 = vmax.f32 %v484_v16, 0.0 }
 0x15f   : > { %v485_v17 = vpop.f32.mrf.mxu3 }
 0x160   : > { %v486_v18 = vadd.f32 %v851_v58, %v485_v17 }
 0x162   : > { %v495_v20 = vmax.f32 %v486_v18, 0.0 }
 0x164   : > { %v499_v21 = vpack.c.bf16 %v495_v20, %v494_v19 }
 0x166   : > { %591 = vmatmul.bf16.gmra.mxu2 %v499_v21 }
 0x1ad   : > { %v577_v22 = vpop.f32.mrf.mxu1 }
 0x1ae   : > { %v578_v24 = vadd.f32 %v852_v23, %v577_v22 }
 0x1b0   : > { %v597_v27 = vmax.f32 %v578_v24, 0.0 }
 0x1b5   : > { %v579_v25 = vpop.f32.mrf.mxu1 }
 0x1b6   : > { %v580_v26 = vadd.f32 %v852_v23, %v579_v25 }
 0x1b8   : > { %v598_v28 = vmax.f32 %v580_v26, 0.0 }
 0x1ba   : > { %v805_v29 = vpack.c.bf16 %v598_v28, %v597_v27 }
 0x1bc   : > { %806 = vst [vmem:[%s280_s14] sm:$0xff] %v805_v29  }
 0x1c9   : > { %v582_v30 = vpop.f32.mrf.mxu2 }
 0x1ca   : > { %v583_v31 = vadd.f32 %v852_v23, %v582_v30 }
 0x1cc   : > { %v599_v34 = vmax.f32 %v583_v31, 0.0 }
 0x1d1   : > { %v584_v32 = vpop.f32.mrf.mxu2 }
 0x1d2   : > { %v585_v33 = vadd.f32 %v852_v23, %v584_v32 }
 0x1d4   : > { %v600_v35 = vmax.f32 %v585_v33, 0.0 }
 0x1d6   : > { %v810_v36 = vpack.c.bf16 %v600_v35, %v599_v34 }
 0x1d8   : > { %822 = vst [vmem:[%s280_s14 + $0x8] sm:$0xff] %v810_v36  }
 0x1d9   : > { %v587_v37 = vpop.f32.mrf.mxu2 }
 0x1da   : > { %v588_v38 = vadd.f32 %v852_v23, %v587_v37 }
 0x1dc   : > { %v601_v41 = vmax.f32 %v588_v38, 0.0 }
 0x1e1   : > { %v589_v39 = vpop.f32.mrf.mxu2 }
 0x1e2   : > { %v590_v40 = vadd.f32 %v852_v23, %v589_v39 }
 0x1e4   : > { %v602_v42 = vmax.f32 %v590_v40, 0.0 }
 0x1e6   : > { %v815_v43 = vpack.c.bf16 %v602_v42, %v601_v41 }
 0x1e8   : > { %823 = vst [vmem:[%s280_s14 + $0x10] sm:$0xff] %v815_v43  }
 0x1e9   : > { %v592_v44 = vpop.f32.mrf.mxu2 }
 0x1ea   : > { %v593_v45 = vadd.f32 %v852_v23, %v592_v44 }
 0x1ec   : > { %v603_v48 = vmax.f32 %v593_v45, 0.0 }
 0x1f1   : > { %v594_v46 = vpop.f32.mrf.mxu2 }
 0x1f2   : > { %v595_v47 = vadd.f32 %v852_v23, %v594_v46 }
 0x1f4   : > { %v604_v49 = vmax.f32 %v595_v47, 0.0 }
 0x1f6   : > { %v820_v50 = vpack.c.bf16 %v604_v49, %v603_v48 }
 0x1f8   : > { %824 = vst [vmem:[%s280_s14 + $0x18] sm:$0xff] %v820_v50  }
 0x1f9 PF: > { %s17_s24 = sadd.s32 1, %s859_s24  }
 0x1fa   : > { %p14_p4 = scmp.ge.s32.totalorder %s17_s24, 4  }
 0x1fc   :  { %16 = sbr.rel (!%p14_p4) target bundleno = 1 (0x1), region = 78 }

// kernel: nin_binary_forward.3
= control target key start
LH: loop header
LB: loop body
LE: loop exit
PB: predicated region body
PF: predicated region fallthrough
CT: control target
= control target key end

     0   :  { %s2159_s30 = smov 0   ;;  %s2161_s10 = smov 0   ;;  %s2520_s0 = inlined_call_operand.vmem [shape: bf16[2,16,1152], index: 0, kind: input, shape index: {}]   ;;  %s2521_s1 = inlined_call_operand.vmem [shape: bf16[1152,128], index: 1, kind: input, shape index: {}]   ;;  %s2522_s2 = inlined_call_operand.vmem [shape: f32[1,128], index: 2, kind: input, shape index: {}]   ;;  %s2523_s3 = inlined_call_operand.vmem [shape: bf16[128,128], index: 3, kind: input, shape index: {}]   ;;  %s2524_s4 = inlined_call_operand.vmem [shape: f32[1,128], index: 4, kind: input, shape index: {}]   ;;  %s2525_s5 = inlined_call_operand.vmem [shape: bf16[128,128], index: 5, kind: input, shape index: {}]   ;;  %s2526_s6 = inlined_call_operand.vmem [shape: f32[1,128], index: 6, kind: input, shape index: {}]   ;;  %s2527_s7 = inlined_call_operand.vmem [shape: bf16[128,128], index: 7, kind: input, shape index: {}]   ;;  %s2528_s8 = inlined_call_operand.vmem [shape: f32[1,128], index: 8, kind: input, shape index: {}]   ;;  %s2529_s9 = inlined_call_operand.vmem [shape: f32[2,8,128], index: 9, kind: output, shape index: {}]  }
   0x1   :  { %s2163_s11 = smov 0  }
   0x2 LB: > { %s31_s12 = sadd.s32 1, %s2100_s10  ;;  %p1519_p0 = scmp.ge.s32.totalorder %s2104_s11, 1  ;;  %s2104_s11 = sphi %s2163_s11, %s19_s11   ;;  %s2100_s10 = sphi %s2161_s10, %s2531_s10   ;;  %s2096_s30 = sphi %s2159_s30, %s2530_s30  }
   0x3   : > { %p33_p1 = scmp.ge.s32.totalorder %s31_s12, 2  ;;  %p307_p2 = scmp.lt.s32.totalorder %s2104_s11, 3 }
   0x5   : > { %s2533_s12 = smov (%p33_p1, %s31_s12), 0  ;;  %p308_p3 = pnand %p1519_p0, %p307_p2 }
   0x6   : > { %p348_p4 = scmp.lt.s32.totalorder (!%p308_p3), %s2096_s30, 1  ;;  %s2107_s18 = smov (!%p308_p3), 1  }
   0x7   : > { %311 = sbr.rel (%p308_p3) target bundleno = 939 (0x3ab), region = 56 }
   0xc   : > { %v1960_v0 = vld [vmem:[%s2521_s1 + $0x38] sm:$0xff]  ;;  %v1959_v4 = vld [vmem:[%s2521_s1 + $0x30] sm:$0xff]  ;;  %v1958_v8 = vld [vmem:[%s2521_s1 + $0x28] sm:$0xff]  ;;  %s2535_s30 = smov (!%p348_p4, %s2096_s30), 1 }
   0xd   : > { %v1976_v1 = vld [vmem:[%s2521_s1 + $0xb8] sm:$0xff]  ;;  %1003 = vmatpush.bf16.msra.mxu0 %v1960_v0  ;;  %v1975_v5 = vld [vmem:[%s2521_s1 + $0xb0] sm:$0xff]  ;;  %v1974_v9 = vld [vmem:[%s2521_s1 + $0xa8] sm:$0xff]  ;;  %s2049_s27 = smul.u32 72, %s2535_s30  ;;  %s1521_s19 = sshll.u32 %s2535_s30, 3 }
   0xe   : > { %v1968_v2 = vld [vmem:[%s2521_s1 + $0x78] sm:$0xff]  ;;  %1031 = vmatpush.bf16.msra.mxu2 %v1976_v1  ;;  %v1967_v6 = vld [vmem:[%s2521_s1 + $0x70] sm:$0xff]  ;;  %v1966_v10 = vld [vmem:[%s2521_s1 + $0x68] sm:$0xff]  ;;  %s361_s22 = scalar_lea.vmem %s2529_s9, %s1521_s19 }
   0xf   : > { %v1984_v3 = vld [vmem:[%s2521_s1 + $0xf8] sm:$0xff]  ;;  %1017 = vmatpush.bf16.msra.mxu1 %v1968_v2  ;;  %v1983_v7 = vld [vmem:[%s2521_s1 + $0xf0] sm:$0xff]  ;;  %v1982_v11 = vld [vmem:[%s2521_s1 + $0xe8] sm:$0xff]  ;;  %s2271_s21 = scalar_lea.vmem %s2520_s0, %s2049_s27 }
  0x10   : > { %1045 = vmatpush.bf16.msra.mxu3 %v1984_v3  ;;  %v1957_v12 = vld [vmem:[%s2521_s1 + $0x20] sm:$0xff]  ;;  %v1956_v16 = vld [vmem:[%s2521_s1 + $0x18] sm:$0xff]  ;;  %v1955_v20 = vld [vmem:[%s2521_s1 + $0x10] sm:$0xff] }
  0x11   : > { %1004 = vmatpush.bf16.msra.mxu0 %v1959_v4  ;;  %v1973_v13 = vld [vmem:[%s2521_s1 + $0xa0] sm:$0xff]  ;;  %v1972_v17 = vld [vmem:[%s2521_s1 + $0x98] sm:$0xff]  ;;  %v1971_v21 = vld [vmem:[%s2521_s1 + $0x90] sm:$0xff] }
  0x12   : > { %1032 = vmatpush.bf16.msra.mxu2 %v1975_v5  ;;  %v1965_v14 = vld [vmem:[%s2521_s1 + $0x60] sm:$0xff]  ;;  %v1964_v18 = vld [vmem:[%s2521_s1 + $0x58] sm:$0xff]  ;;  %v1963_v22 = vld [vmem:[%s2521_s1 + $0x50] sm:$0xff] }
  0x13   : > { %1018 = vmatpush.bf16.msra.mxu1 %v1967_v6  ;;  %v1981_v15 = vld [vmem:[%s2521_s1 + $0xe0] sm:$0xff]  ;;  %v1980_v19 = vld [vmem:[%s2521_s1 + $0xd8] sm:$0xff]  ;;  %v1979_v23 = vld [vmem:[%s2521_s1 + $0xd0] sm:$0xff] }
  0x14   : > { %1046 = vmatpush.bf16.msra.mxu3 %v1983_v7  ;;  %v1954_v24 = vld [vmem:[%s2521_s1 + $0x8] sm:$0xff]  ;;  %v1953_v28 = vld [vmem:[%s2521_s1] sm:$0xff]  ;;  %v1992_v30 = vld [vmem:[%s2521_s1 + $0x138] sm:$0xff] }
  0x15   : > { %1005 = vmatpush.bf16.msra.mxu0 %v1958_v8  ;;  %v1970_v25 = vld [vmem:[%s2521_s1 + $0x88] sm:$0xff]  ;;  %v1969_v29 = vld [vmem:[%s2521_s1 + $0x80] sm:$0xff]  ;;  %v2008_v31 = vld [vmem:[%s2521_s1 + $0x1b8] sm:$0xff] }
  0x16   : > { %1033 = vmatpush.bf16.msra.mxu2 %v1974_v9  ;;  %v1962_v26 = vld [vmem:[%s2521_s1 + $0x48] sm:$0xff]  ;;  %v1961_v32 = vld [vmem:[%s2521_s1 + $0x40] sm:$0xff]  ;;  %v2000_v38 = vld [vmem:[%s2521_s1 + $0x178] sm:$0xff] }
  0x17   : > { %1019 = vmatpush.bf16.msra.mxu1 %v1966_v10  ;;  %v1978_v27 = vld [vmem:[%s2521_s1 + $0xc8] sm:$0xff]  ;;  %v1977_v33 = vld [vmem:[%s2521_s1 + $0xc0] sm:$0xff]  ;;  %v2016_v39 = vld [vmem:[%s2521_s1 + $0x1f8] sm:$0xff] }
  0x18   : > { %1047 = vmatpush.bf16.msra.mxu3 %v1982_v11  ;;  %v1524_v34 = vld [vmem:[%s2271_s21] sm:$0xf]  ;;  %v1948_v35 = vld [vmem:[%s2271_s21 + $0x20] sm:$0xf0]  ;;  %v1532_v36 = vld [vmem:[%s2271_s21 + $0x8] sm:$0xf] }
  0x19   : > { %1006 = vmatpush.bf16.msra.mxu0 %v1957_v12  ;;  %v1949_v37 = vld [vmem:[%s2271_s21 + $0x28] sm:$0xf0]  ;;  %v1944_v40 = vld [vmem:[%s2271_s21 + $0x4] sm:$0xf]  ;;  %v1526_v41 = vld [vmem:[%s2271_s21 + $0x24] sm:$0xf0]  ;;  %v1525_v44 = vor.u32 %v1948_v35, %v1524_v34 }
  0x1a   : > { %1034 = vmatpush.bf16.msra.mxu2 %v1973_v13  ;;  %v1945_v42 = vld [vmem:[%s2271_s21 + $0xc] sm:$0xf]  ;;  %v1534_v43 = vld [vmem:[%s2271_s21 + $0x2c] sm:$0xf0]  ;;  %v1533_v45 = vor.u32 %v1949_v37, %v1532_v36  ;;  %v1529_v48 = vor.u32 %v1944_v40, %v1526_v41  ;;  %v1989_v56 = vld [vmem:[%s2521_s1 + $0x120] sm:$0xff] }
  0x1b   : > { %1020 = vmatpush.bf16.msra.mxu1 %v1965_v14  ;;  %v1991_v46 = vld [vmem:[%s2521_s1 + $0x130] sm:$0xff]  ;;  %v1537_v49 = vor.u32 %v1945_v42, %v1534_v43  ;;  %v1990_v52 = vld [vmem:[%s2521_s1 + $0x128] sm:$0xff]  ;;  %v2005_v57 = vld [vmem:[%s2521_s1 + $0x1a0] sm:$0xff] }
  0x1c   : > { %1048 = vmatpush.bf16.msra.mxu3 %v1981_v15  ;;  %v2007_v47 = vld [vmem:[%s2521_s1 + $0x1b0] sm:$0xff]  ;;  %v2006_v53 = vld [vmem:[%s2521_s1 + $0x1a8] sm:$0xff]  ;;  %v1997_v58 = vld [vmem:[%s2521_s1 + $0x160] sm:$0xff] }
  0x1d   : > { %1007 = vmatpush.bf16.msra.mxu0 %v1956_v16  ;;  %v1999_v50 = vld [vmem:[%s2521_s1 + $0x170] sm:$0xff]  ;;  %v1998_v54 = vld [vmem:[%s2521_s1 + $0x168] sm:$0xff]  ;;  %v2013_v59 = vld [vmem:[%s2521_s1 + $0x1e0] sm:$0xff] }
  0x1e   : > { %1035 = vmatpush.bf16.msra.mxu2 %v1972_v17  ;;  %v2015_v51 = vld [vmem:[%s2521_s1 + $0x1f0] sm:$0xff]  ;;  %v2014_v55 = vld [vmem:[%s2521_s1 + $0x1e8] sm:$0xff]  ;;  %v1988_v60 = vld [vmem:[%s2521_s1 + $0x118] sm:$0xff] }
  0x1f   : > { %1021 = vmatpush.bf16.msra.mxu1 %v1964_v18  ;;  %v2004_v61 = vld [vmem:[%s2521_s1 + $0x198] sm:$0xff]  ;;  %v1987_v0 = vld [vmem:[%s2521_s1 + $0x110] sm:$0xff]  ;;  %v1986_v4 = vld [vmem:[%s2521_s1 + $0x108] sm:$0xff] }
  0x20   : > { %1049 = vmatpush.bf16.msra.mxu3 %v1980_v19  ;;  %v1996_v62 = vld [vmem:[%s2521_s1 + $0x158] sm:$0xff]  ;;  %v2003_v1 = vld [vmem:[%s2521_s1 + $0x190] sm:$0xff]  ;;  %v2002_v5 = vld [vmem:[%s2521_s1 + $0x188] sm:$0xff] }
  0x21   : > { %1008 = vmatpush.bf16.msra.mxu0 %v1955_v20  ;;  %v2012_v63 = vld [vmem:[%s2521_s1 + $0x1d8] sm:$0xff]  ;;  %v1995_v2 = vld [vmem:[%s2521_s1 + $0x150] sm:$0xff]  ;;  %v1994_v6 = vld [vmem:[%s2521_s1 + $0x148] sm:$0xff] }
  0x22   : > { %1036 = vmatpush.bf16.msra.mxu2 %v1971_v21  ;;  %v2011_v3 = vld [vmem:[%s2521_s1 + $0x1d0] sm:$0xff]  ;;  %v2010_v7 = vld [vmem:[%s2521_s1 + $0x1c8] sm:$0xff]  ;;  %v1985_v8 = vld [vmem:[%s2521_s1 + $0x100] sm:$0xff] }
  0x23   : > { %1022 = vmatpush.bf16.msra.mxu1 %v1963_v22  ;;  %v2001_v9 = vld [vmem:[%s2521_s1 + $0x180] sm:$0xff]  ;;  %v2024_v10 = vld [vmem:[%s2521_s1 + $0x238] sm:$0xff]  ;;  %v1540_v11 = vld [vmem:[%s2271_s21 + $0x10] sm:$0xf] }
  0x24   : > { %1050 = vmatpush.bf16.msra.mxu3 %v1979_v23  ;;  %v1950_v12 = vld [vmem:[%s2271_s21 + $0x30] sm:$0xf0]  ;;  %v1548_v13 = vld [vmem:[%s2271_s21 + $0x18] sm:$0xf]  ;;  %v1951_v14 = vld [vmem:[%s2271_s21 + $0x38] sm:$0xf0] }
  0x25   : > { %1009 = vmatpush.bf16.msra.mxu0 %v1954_v24  ;;  %v1993_v15 = vld [vmem:[%s2521_s1 + $0x140] sm:$0xff]  ;;  %v1946_v17 = vld [vmem:[%s2271_s21 + $0x14] sm:$0xf]  ;;  %v1542_v18 = vld [vmem:[%s2271_s21 + $0x34] sm:$0xf0]  ;;  %v1541_v21 = vor.u32 %v1950_v12, %v1540_v11  ;;  %v1549_v22 = vor.u32 %v1951_v14, %v1548_v13 }
  0x26   : > { %1037 = vmatpush.bf16.msra.mxu2 %v1970_v25  ;;  %v2009_v16 = vld [vmem:[%s2521_s1 + $0x1c0] sm:$0xff]  ;;  %v1947_v19 = vld [vmem:[%s2271_s21 + $0x1c] sm:$0xf]  ;;  %v1545_v23 = vor.u32 %v1946_v17, %v1542_v18  ;;  %v2023_v25 = vld [vmem:[%s2521_s1 + $0x230] sm:$0xff] }
  0x27   : > { %1023 = vmatpush.bf16.msra.mxu1 %v1962_v26  ;;  %v1550_v20 = vld [vmem:[%s2271_s21 + $0x3c] sm:$0xf0]  ;;  %v2022_v26 = vld [vmem:[%s2521_s1 + $0x228] sm:$0xff]  ;;  %v2032_v35 = vld [vmem:[%s2523_s3 + $0x38] sm:$0xff] }
  0x28   : > { %1051 = vmatpush.bf16.msra.mxu3 %v1978_v27  ;;  %v1553_v24 = vor.u32 %v1947_v19, %v1550_v20  ;;  %v2021_v27 = vld [vmem:[%s2521_s1 + $0x220] sm:$0xff]  ;;  %v2031_v36 = vld [vmem:[%s2523_s3 + $0x30] sm:$0xff]  ;;  %v2030_v37 = vld [vmem:[%s2523_s3 + $0x28] sm:$0xff] }
  0x29   : > { %1010 = vmatpush.bf16.msra.mxu0 %v1953_v28  ;;  %v2020_v28 = vld [vmem:[%s2521_s1 + $0x218] sm:$0xff]  ;;  %v2027_v43 = vld [vmem:[%s2523_s3 + $0x10] sm:$0xff] }
  0x2a   : > { %1038 = vmatpush.bf16.msra.mxu2 %v1969_v29  ;;  %v2019_v29 = vld [vmem:[%s2521_s1 + $0x210] sm:$0xff]  ;;  %v2028_v40 = vld [vmem:[%s2523_s3 + $0x18] sm:$0xff] }
  0x2b   : > { %1024 = vmatpush.bf16.msra.mxu1 %v1961_v32  ;;  %v1556_v32 = vld [vmem:[%s2271_s21 + $0x20] sm:$0xf] }
  0x2c   : > { %1052 = vmatpush.bf16.msra.mxu3 %v1977_v33  ;;  %1011 = vmatmul.bf16.vlgmr.msra.gmra.mxu0 %v1525_v44  ;;  %v1952_v33 = vld [vmem:[%s2271_s21 + $0x40] sm:$0xf0] }
  0x2d   : > { %1059 = vmatpush.bf16.msrb.mxu0 %v1992_v30  ;;  %1039 = vmatmul.bf16.vlgmr.msra.gmra.mxu2 %v1533_v45  ;;  %v2018_v30 = vld [vmem:[%s2521_s1 + $0x208] sm:$0xff]  ;;  %v1557_v34 = vor.u32 %v1952_v33, %v1556_v32  ;;  %v2078_v45 = vld [vmem:[%s2522_s2] ss:$0 sm:$0xff] }
  0x2e   : > { %1087 = vmatpush.bf16.msrb.mxu2 %v2008_v31  ;;  %1025 = vmatmul.bf16.vlgmr.msra.gmra.mxu1 %v1529_v48  ;;  %v2017_v31 = vld [vmem:[%s2521_s1 + $0x200] sm:$0xff] }
  0x2f   : > { %1073 = vmatpush.bf16.msrb.mxu1 %v2000_v38  ;;  %1053 = vmatmul.bf16.vlgmr.msra.gmra.mxu3 %v1537_v49  ;;  %v2029_v38 = vld [vmem:[%s2523_s3 + $0x20] sm:$0xff] }
  0x30   : > { %1101 = vmatpush.bf16.msrb.mxu3 %v2016_v39  ;;  %v2079_v32 = vld [vmem:[%s2524_s4] ss:$0 sm:$0xff] }
  0x31   : > { %1060 = vmatpush.bf16.msrb.mxu0 %v1991_v46 }
  0x32   : > { %1088 = vmatpush.bf16.msrb.mxu2 %v2007_v47  ;;  %v2026_v47 = vld [vmem:[%s2523_s3 + $0x8] sm:$0xff] }
  0x33   : > { %1074 = vmatpush.bf16.msrb.mxu1 %v1999_v50  ;;  %v2025_v50 = vld [vmem:[%s2523_s3] sm:$0xff] }
  0x34   : > { %1102 = vmatpush.bf16.msrb.mxu3 %v2015_v51 }
  0x35   : > { %1061 = vmatpush.bf16.msrb.mxu0 %v1990_v52 }
  0x36   : > { %1089 = vmatpush.bf16.msrb.mxu2 %v2006_v53 }
  0x37   : > { %1075 = vmatpush.bf16.msrb.mxu1 %v1998_v54 }
  0x38   : > { %1103 = vmatpush.bf16.msrb.mxu3 %v2014_v55  ;;  %v2040_v55 = vld [vmem:[%s2525_s5 + $0x38] sm:$0xff] }
  0x39   : > { %1062 = vmatpush.bf16.msrb.mxu0 %v1989_v56 }
  0x3a   : > { %1090 = vmatpush.bf16.msrb.mxu2 %v2005_v57 }
  0x3b   : > { %1076 = vmatpush.bf16.msrb.mxu1 %v1997_v58  ;;  %v2039_v58 = vld [vmem:[%s2525_s5 + $0x30] sm:$0xff] }
  0x3c   : > { %1104 = vmatpush.bf16.msrb.mxu3 %v2013_v59 }
  0x3d   : > { %1063 = vmatpush.bf16.msrb.mxu0 %v1988_v60 }
  0x3e   : > { %1091 = vmatpush.bf16.msrb.mxu2 %v2004_v61 }
  0x3f   : > { %1077 = vmatpush.bf16.msrb.mxu1 %v1996_v62  ;;  %v2038_v62 = vld [vmem:[%s2525_s5 + $0x28] sm:$0xff] }
  0x40   : > { %1105 = vmatpush.bf16.msrb.mxu3 %v2012_v63 }
  0x41   : > { %1064 = vmatpush.bf16.msrb.mxu0 %v1987_v0 }
  0x42   : > { %1092 = vmatpush.bf16.msrb.mxu2 %v2003_v1 }
  0x43   : > { %1078 = vmatpush.bf16.msrb.mxu1 %v1995_v2 }
  0x44   : > { %1106 = vmatpush.bf16.msrb.mxu3 %v2011_v3  ;;  %v2037_v3 = vld [vmem:[%s2525_s5 + $0x20] sm:$0xff] }
  0x45   : > { %1065 = vmatpush.bf16.msrb.mxu0 %v1986_v4 }
  0x46   : > { %1093 = vmatpush.bf16.msrb.mxu2 %v2002_v5 }
  0x47   : > { %1079 = vmatpush.bf16.msrb.mxu1 %v1994_v6 }
  0x48   : > { %1107 = vmatpush.bf16.msrb.mxu3 %v2010_v7 }
  0x49   : > { %1066 = vmatpush.bf16.msrb.mxu0 %v1985_v8 }
  0x4a   : > { %1094 = vmatpush.bf16.msrb.mxu2 %v2001_v9 }
  0x4b   : > { %1080 = vmatpush.bf16.msrb.mxu1 %v1993_v15 }
  0x4c   : > { %1108 = vmatpush.bf16.msrb.mxu3 %v2009_v16  ;;  %1067 = vmatmul.bf16.vlgmr.msrb.gmra.mxu0 %v1541_v21 }
  0x4d   : > { %1115 = vmatpush.bf16.msra.mxu0 %v2024_v10  ;;  %1095 = vmatmul.bf16.vlgmr.msrb.gmra.mxu2 %v1549_v22 }
  0x4e   : > { %1081 = vmatmul.bf16.vlgmr.msrb.gmra.mxu1 %v1545_v23  ;;  %1285 = vmatpush.bf16.msra.mxu2 %v2040_v55  ;;  %v2036_v23 = vld [vmem:[%s2525_s5 + $0x18] sm:$0xff] }
  0x4f   : > { %1109 = vmatmul.bf16.vlgmr.msrb.gmra.mxu3 %v1553_v24  ;;  %1200 = vmatpush.bf16.msra.mxu1 %v2032_v35  ;;  %v2035_v24 = vld [vmem:[%s2525_s5 + $0x10] sm:$0xff] }
  0x51   : > { %1116 = vmatpush.bf16.msra.mxu0 %v2023_v25  ;;  %v2034_v25 = vld [vmem:[%s2525_s5 + $0x8] sm:$0xff] }
  0x52   : > { %1286 = vmatpush.bf16.msra.mxu2 %v2039_v58 }
  0x53   : > { %1201 = vmatpush.bf16.msra.mxu1 %v2031_v36 }
  0x55   : > { %1117 = vmatpush.bf16.msra.mxu0 %v2022_v26  ;;  %v2033_v26 = vld [vmem:[%s2525_s5] sm:$0xff] }
  0x56   : > { %1287 = vmatpush.bf16.msra.mxu2 %v2038_v62 }
  0x57   : > { %1202 = vmatpush.bf16.msra.mxu1 %v2030_v37 }
  0x59   : > { %1118 = vmatpush.bf16.msra.mxu0 %v2021_v27  ;;  %v2048_v27 = vld [vmem:[%s2527_s7 + $0x38] sm:$0xff] }
  0x5a   : > { %1288 = vmatpush.bf16.msra.mxu2 %v2037_v3  ;;  %1370 = vmatpush.bf16.msra.mxu3 %v2048_v27 }
  0x5b   : > { %1203 = vmatpush.bf16.msra.mxu1 %v2029_v38 }
  0x5d   : > { %1119 = vmatpush.bf16.msra.mxu0 %v2020_v28  ;;  %v2047_v28 = vld [vmem:[%s2527_s7 + $0x30] sm:$0xff] }
  0x5e   : > { %1289 = vmatpush.bf16.msra.mxu2 %v2036_v23  ;;  %1371 = vmatpush.bf16.msra.mxu3 %v2047_v28 }
  0x5f   : > { %1204 = vmatpush.bf16.msra.mxu1 %v2028_v40  ;;  %v2043_v40 = vld [vmem:[%s2527_s7 + $0x10] sm:$0xff] }
  0x61   : > { %1120 = vmatpush.bf16.msra.mxu0 %v2019_v29  ;;  %v2046_v29 = vld [vmem:[%s2527_s7 + $0x28] sm:$0xff] }
  0x62   : > { %1290 = vmatpush.bf16.msra.mxu2 %v2035_v24  ;;  %1372 = vmatpush.bf16.msra.mxu3 %v2046_v29 }
  0x63   : > { %1205 = vmatpush.bf16.msra.mxu1 %v2027_v43 }
  0x65   : > { %1121 = vmatpush.bf16.msra.mxu0 %v2018_v30  ;;  %v2045_v30 = vld [vmem:[%s2527_s7 + $0x20] sm:$0xff] }
  0x66   : > { %1291 = vmatpush.bf16.msra.mxu2 %v2034_v25  ;;  %1373 = vmatpush.bf16.msra.mxu3 %v2045_v30 }
  0x67   : > { %1206 = vmatpush.bf16.msra.mxu1 %v2026_v47 }
  0x69   : > { %1122 = vmatpush.bf16.msra.mxu0 %v2017_v31 }
  0x6a   : > { %1292 = vmatpush.bf16.msra.mxu2 %v2033_v26 }
  0x6b   : > { %1207 = vmatpush.bf16.msra.mxu1 %v2025_v50 }
  0x6c   : > { %1123 = vmatmul.bf16.vlgmr.msra.gmra.mxu0 %v1557_v34 }
  0xa9   : > { %v1012_v39 = vpop.f32.mrf.mxu0 }
  0xaa   : > { %v1013_v48 = vadd.f32 %v2078_v45, %v1012_v39  ;;  %v2044_v39 = vld [vmem:[%s2527_s7 + $0x18] sm:$0xff] }
  0xab   : > { %v1026_v41 = vpop.f32.mrf.mxu1  ;;  %1374 = vmatpush.bf16.msra.mxu3 %v2044_v39 }
  0xac   : > { %v1027_v52 = vadd.f32 %v1026_v41, %v1013_v48  ;;  %v2042_v41 = vld [vmem:[%s2527_s7 + $0x8] sm:$0xff] }
  0xaf   : > { %1375 = vmatpush.bf16.msra.mxu3 %v2043_v40 }
  0xb0   : > { %v1040_v42 = vpop.f32.mrf.mxu2 }
  0xb1   : > { %v1014_v44 = vpop.f32.mrf.mxu0  ;;  %v1041_v57 = vadd.f32 %v1040_v42, %v1027_v52  ;;  %v2041_v42 = vld [vmem:[%s2527_s7] sm:$0xff] }
  0xb2   : > { %v1054_v46 = vpop.f32.mrf.mxu3  ;;  %v1015_v54 = vadd.f32 %v2078_v45, %v1014_v44  ;;  %v2080_v44 = vld [vmem:[%s2526_s6] ss:$0 sm:$0xff] }
  0xb3   : > { %v1028_v49 = vpop.f32.mrf.mxu1  ;;  %v1055_v61 = vadd.f32 %v1054_v46, %v1041_v57  ;;  %1376 = vmatpush.bf16.msra.mxu3 %v2042_v41 }
  0xb4   : > { %v1029_v59 = vadd.f32 %v1028_v49, %v1015_v54 }
  0xb7   : > { %1377 = vmatpush.bf16.msra.mxu3 %v2041_v42 }
  0xb8   : > { %v1042_v51 = vpop.f32.mrf.mxu2 }
  0xb9   : > { %v1043_v0 = vadd.f32 %v1042_v51, %v1029_v59  ;;  %v2106_v51 = vmov 0.0  }
  0xba   : > { %v1056_v56 = vpop.f32.mrf.mxu3  ;;  %366 = vst [vmem:[#allocation2] sm:$0x1] %v2106_v51 }
  0xbb   : > { %v1057_v5 = vadd.f32 %v1056_v56, %v1043_v0 }
  0xc9   : > { %v1068_v53 = vpop.f32.mrf.mxu0 }
  0xca   : > { %v1069_v2 = vadd.f32 %v1068_v53, %v1055_v61  ;;  %v2081_v53 = vld [vmem:[%s2528_s8] ss:$0 sm:$0xff] }
  0xcb   : > { %v1082_v60 = vpop.f32.mrf.mxu1 }
  0xcc   : > { %v1083_v6 = vadd.f32 %v1082_v60, %v1069_v2 }
  0xd0   : > { %v1096_v63 = vpop.f32.mrf.mxu2 }
  0xd1   : > { %v1070_v1 = vpop.f32.mrf.mxu0  ;;  %v1097_v11 = vadd.f32 %v1096_v63, %v1083_v6  ;;  %v2108_v6 = vmov 1  }
  0xd2   : > { %v1110_v4 = vpop.f32.mrf.mxu3  ;;  %v1071_v7 = vadd.f32 %v1070_v1, %v1057_v5  ;;  %v1392_v1 = vld [vmem:[#allocation2] sm:$0x1]  ;;  %2077 = vset.pattern.permute.xlu0 %v2108_v6 }
  0xd3   : > { %v1084_v8 = vpop.f32.mrf.mxu1  ;;  %v1111_v15 = vadd.f32 %v1110_v4, %v1097_v11 }
  0xd4   : > { %v1085_v12 = vadd.f32 %v1084_v8, %v1071_v7 }
  0xd8   : > { %v1098_v9 = vpop.f32.mrf.mxu2 }
  0xd9   : > { %v1099_v13 = vadd.f32 %v1098_v9, %v1085_v12 }
  0xda   : > { %v1112_v14 = vpop.f32.mrf.mxu3 }
  0xdb   : > { %v1113_v16 = vadd.f32 %v1112_v14, %v1099_v13 }
  0xe9   : > { %v1124_v10 = vpop.f32.mrf.mxu0 }
  0xea   : > { %v1125_v17 = vadd.f32 %v1124_v10, %v1111_v15 }
  0xec   : > { %v1129_v20 = vmax.f32 %v1125_v17, 0.0 }
  0xf1   : > { %v1126_v18 = vpop.f32.mrf.mxu0 }
  0xf2   : > { %v1127_v19 = vadd.f32 %v1126_v18, %v1113_v16 }
  0xf4   : > { %v1130_v21 = vmax.f32 %v1127_v19, 0.0 }
  0xf6   : > { %v1131_v22 = vpack.c.bf16 %v1130_v21, %v1129_v20 }
  0xf8   : > { %1208 = vmatmul.bf16.vlgmr.msra.gmra.mxu1 %v1131_v22 }
 0x175   : > { %v1209_v31 = vpop.f32.mrf.mxu1 }
 0x176   : > { %v1210_v33 = vadd.f32 %v2079_v32, %v1209_v31 }
 0x178   : > { %v1214_v36 = vmax.f32 %v1210_v33, 0.0 }
 0x17d   : > { %v1211_v34 = vpop.f32.mrf.mxu1 }
 0x17e   : > { %v1212_v35 = vadd.f32 %v2079_v32, %v1211_v34 }
 0x180   : > { %v1215_v37 = vmax.f32 %v1212_v35, 0.0 }
 0x182   : > { %v1216_v38 = vpack.c.bf16 %v1215_v37, %v1214_v36 }
 0x184   : > { %1293 = vmatmul.bf16.vlgmr.msra.gmra.mxu2 %v1216_v38 }
 0x207   : > { %v1294_v43 = vpop.f32.mrf.mxu2 }
 0x208   : > { %v1295_v45 = vadd.f32 %v2080_v44, %v1294_v43 }
 0x20a   : > { %v1299_v48 = vmax.f32 %v1295_v45, 0.0 }
 0x20f   : > { %v1296_v46 = vpop.f32.mrf.mxu2 }
 0x210   : > { %v1297_v47 = vadd.f32 %v2080_v44, %v1296_v46 }
 0x212   : > { %v1300_v49 = vmax.f32 %v1297_v47, 0.0 }
 0x214   : > { %v1301_v50 = vpack.c.bf16 %v1300_v49, %v1299_v48 }
 0x216   : > { %1378 = vmatmul.bf16.vlgmr.msra.gmra.mxu3 %v1301_v50 }
 0x299   : > { %v1379_v52 = vpop.f32.mrf.mxu3 }
 0x29a   : > { %v1380_v54 = vadd.f32 %v2081_v53, %v1379_v52 }
 0x29c   : > { %v1384_v57 = vmax.f32 %v1380_v54, 0.0 }
 0x2a1   : > { %v1381_v55 = vpop.f32.mrf.mxu3 }
 0x2a2   : > { %v1382_v56 = vadd.f32 %v2081_v53, %v1381_v55 }
 0x2a4   : > { %v1385_v58 = vmax.f32 %v1382_v56, 0.0 }
 0x2a6   : > { %v1393_v59 = vadd.f32 %v1385_v58, %v1384_v57 }
 0x2a8   : > { %v1394_v60 = vrot.slane %v1393_v59, 4 }
 0x2aa   : > { %v1395_v61 = vadd.f32 %v1394_v60, %v1393_v59 }
 0x2ac   : > { %v1396_v62 = vrot.slane %v1395_v61, 2 }
 0x2ae   : > { %v1397_v63 = vadd.f32 %v1396_v62, %v1395_v61 }
 0x2b0   : > { %v1398_v0 = vrot.slane %v1397_v63, 1 }
 0x2b2   : > { %v1399_v2 = vadd.f32 %v1398_v0, %v1397_v63 }
 0x2b4   : > { %v1400_v3 = vadd.f32 %v1399_v2, %v1392_v1 }
 0x2b6   : > { %1401 = vst [vmem:[#allocation2] sm:$0x1] %v1400_v3 }
 0x2bd   : > { %v1431_v4 = vld [vmem:[#allocation2] sm:$0x1] }
 0x2be   : > { %v1432_v5 = vmul.f32 0.0625, %v1431_v4 }
 0x2c0   : > { %1434 = vrot.lane.b32.xlu0 %v1432_v5, %s2107_s18 }
 0x332   : > { %v1435_v7 = vpop.permute.xlu0 %1434 }
 0x333   : > { %v1437_v8 = vsub.f32 %v1432_v5, %v1435_v7 }
 0x335   : > { %v1439_v9 = vperm.slane %v1437_v8, 0 }
 0x337   : > { %1441 = vperm.xlu0 %2077, %v1439_v9  }
 0x3a9   : > { %v1442_v10 = vpop.permute.xlu0 %1441 }
 0x3aa   : > { %1444 = vst [vmem:[%s361_s22] sm:$0xff] %v1442_v10 }
 0x3ab PF: > { %s19_s11 = sadd.s32 1, %s2104_s11   ;;  %s2530_s30 = smov %s2100_s10 }
 0x3ac   : > { %p16_p5 = scmp.ge.s32.totalorder %s19_s11, 4   ;;  %s2531_s10 = smov %s2533_s12 }
 0x3ae   :  { %18 = sbr.rel (!%p16_p5) target bundleno = 2 (0x2), region = 102 }

</bundles_post_ra>
